<compile_context>
chip_gen: v7x
topology: tpu7x:2x2x1
jax: 0.10.0
libtpu: 0.0.40
codegen_flags: <defaults>
</compile_context>

<pallas_src>
import jax
import jax.numpy as jnp
from jax import lax
from jax.experimental import pallas as pl
from jax.experimental.pallas import tpu as pltpu


def _spat_attn_kernel(xk_ref, v1_ref, z_ref, xq_ref, out_ref):
    # xk_ref: (1, C, N)  bf16 keys (all pixels)          -- resident across q tiles
    # v1_ref: (1, Cp, N) bf16 [gamma*(Wv x + bv); 1; 0]  -- resident across q tiles
    # z_ref : (1, C, TQ) bf16 folded query projection for this tile
    # xq_ref: (1, C, TQ) x-dtype residual input for this tile
    C = out_ref.shape[1]

    xk = xk_ref[0]                                                    # (C, N)  bf16
    z = z_ref[0]                                                      # (C, TQ) bf16

    # Scores s[j, i] = xk[:, j] . z[:, i]  (K = C contraction, bf16 MXU, f32 acc)
    s = lax.dot_general(xk, z, (((0,), (0,)), ((), ())),
                        preferred_element_type=jnp.float32)           # (N, TQ)

    # Numerically stable softmax over keys (axis 0 = sublanes), in f32;
    # normalization deferred past the value matmul.
    m = jnp.max(s, axis=0, keepdims=True)                             # (1, TQ)
    p = jnp.exp(s - m).astype(jnp.bfloat16)                           # (N, TQ)

    # Fused (gamma*value) matmul + denominator: row C of v1 is all ones, so row C
    # of `acc` is the softmax denominator, computed on the (otherwise idle) MXU.
    acc = jnp.dot(v1_ref[0], p, preferred_element_type=jnp.float32)   # (Cp, TQ)
    o = acc[:C] * pl.reciprocal(acc[C:C + 1], approx=False)           # (C, TQ)

    out_ref[0] = (o + xq_ref[0].astype(jnp.float32)).astype(out_ref.dtype)


def _pick_tq(n):
    """Query-tile width: big enough to amortize per-step overhead, small enough
    that the (N, TQ) f32 scores + bf16 probs (~10 B/elem) stay under ~8 MiB."""
    if n <= 512:
        return n
    budget_elems = (8 << 20) // 10
    for cand in (512, 256, 128):
        if n % cand == 0 and n * cand <= budget_elems:
            return cand
    if n % 128 == 0:
        return 128
    return n  # N not a multiple of 128: correct, but stores become masked.


def spat_attn(x_nchw, wq, bq, wk, bk, wv, bv, gamma, *, tq=None):
    """SpatAttn forward.

    x_nchw: (B, C, H, W).  Conv2d(1x1) parameters in PyTorch (out, in) layout:
      wq, wk: (C//ratio, C); bq, bk: (C//ratio,); wv: (C, C); bv: (C,); gamma: (1,).
    """
    B, C, H, W = x_nchw.shape
    N = H * W
    if tq is None or N % tq != 0:
        tq = _pick_tq(N)
    n_q = N // tq

    f32 = jnp.float32
    bf16 = jnp.bfloat16
    x_bcn = x_nchw.reshape(B, C, N)                  # free reshape, no transpose
    xf = x_bcn.astype(f32)

    # Fold query/key convs (bk cancels inside the softmax; exact algebra).
    mt = jnp.dot(wk.astype(f32).T, wq.astype(f32))                        # (C, C)
    kb = jnp.dot(wk.astype(f32).T, bq.astype(f32))                        # (C,)
    z = jnp.einsum("cd,bdn->bcn", mt, xf) + kb[None, :, None]             # (B, C, N)

    # Value projection with gamma folded in, plus a ones row for the fused
    # softmax denominator; rows padded to a bf16-sublane multiple of 16.
    g = gamma.astype(f32).reshape(())
    v = jnp.einsum("od,bdn->bon", g * wv.astype(f32), xf) \
        + (g * bv.astype(f32))[None, :, None]                             # (B, C, N)
    Cp = ((C + 1 + 15) // 16) * 16
    pad = Cp - (C + 1)
    v1 = jnp.concatenate(
        [v, jnp.ones((B, 1, N), f32), jnp.zeros((B, pad, N), f32)], axis=1)

    xk_bf16 = xf.astype(bf16)
    z_bf16 = z.astype(bf16)
    v1_bf16 = v1.astype(bf16)

    itemsize = jnp.dtype(x_nchw.dtype).itemsize
    cost = pl.CostEstimate(
        flops=2 * B * N * N * (C + Cp),              # scores + fused value matmul
        transcendentals=B * N * N,                   # exp
        bytes_accessed=B * N * (2 * C + 2 * Cp + 2 * C + itemsize * C + itemsize * C),
    )

    out_bcn = pl.pallas_call(
        _spat_attn_kernel,
        out_shape=jax.ShapeDtypeStruct((B, C, N), x_nchw.dtype),
        grid_spec=pltpu.PrefetchScalarGridSpec(
            num_scalar_prefetch=0,
            grid=(B, n_q),
            in_specs=[
                pl.BlockSpec((1, C, N), lambda b, q: (b, 0, 0)),    # keys (resident)
                pl.BlockSpec((1, Cp, N), lambda b, q: (b, 0, 0)),   # [gamma*V;1;0] (resident)
                pl.BlockSpec((1, C, tq), lambda b, q: (b, 0, q)),   # folded query proj tile
                pl.BlockSpec((1, C, tq), lambda b, q: (b, 0, q)),   # residual x tile
            ],
            out_specs=pl.BlockSpec((1, C, tq), lambda b, q: (b, 0, q)),
        ),
        compiler_params=pltpu.CompilerParams(
            dimension_semantics=("parallel", "parallel")),
        cost_estimate=cost,
    )(xk_bf16, v1_bf16, z_bf16, x_bcn)

    return out_bcn.reshape(B, C, H, W)


def spat_attn_reference(x, wq, bq, wk, bk, wv, bv, gamma):
    """Pure-JAX f32 reference mirroring the PyTorch forward exactly (incl. bk)."""
    B, C, H, W = x.shape
    N = H * W
    xf = x.reshape(B, C, N).astype(jnp.float32)                        # (B, C, N)
    q = jnp.einsum("rc,bcn->brn", wq, xf) + bq[None, :, None]          # (B, Cr, N)
    k = jnp.einsum("rc,bcn->brn", wk, xf) + bk[None, :, None]          # (B, Cr, N)
    v = jnp.einsum("oc,bcn->bon", wv, xf) + bv[None, :, None]          # (B, C, N)
    energy = jnp.einsum("brn,brm->bnm", q, k)                          # (B, Ni, Nj)
    attn = jax.nn.softmax(energy, axis=-1)
    out = jnp.einsum("bcm,bnm->bcn", v, attn)                          # (B, C, Ni)
    out = gamma[0] * out + xf
    return out.reshape(B, C, H, W).astype(x.dtype)


if __name__ == "__main__":
    # Module config: in_dim=32, ratio=8 -> reduced dim Cr=4; spatial 16x16 -> N=256.
    B, C, H, W = 2, 32, 16, 16
    RATIO = 8
    Cr = C // RATIO

    key = jax.random.PRNGKey(0)
    kx, kq, kk, kv, kbq, kbk, kbv = jax.random.split(key, 7)

    x = jax.random.normal(kx, (B, C, H, W), dtype=jnp.float32)

    # Conv2d(1x1) weights in PyTorch (out, in) layout, uniform(-1/sqrt(fan_in), ..).
    bound = 1.0 / jnp.sqrt(jnp.float32(C))
    wq = jax.random.uniform(kq, (Cr, C), jnp.float32, -bound, bound)
    wk = jax.random.uniform(kk, (Cr, C), jnp.float32, -bound, bound)
    wv = jax.random.uniform(kv, (C, C), jnp.float32, -bound, bound)
    bq = jax.random.uniform(kbq, (Cr,), jnp.float32, -bound, bound)
    bk = jax.random.uniform(kbk, (Cr,), jnp.float32, -bound, bound)
    bv = jax.random.uniform(kbv, (C,), jnp.float32, -bound, bound)
    # Module inits gamma to 0 (out == x); use 0.5 so the attention path is exercised.
    gamma = jnp.array([0.5], dtype=jnp.float32)

    out = spat_attn(x, wq, bq, wk, bk, wv, bv, gamma)
    out = jax.block_until_ready(out)

    ref = spat_attn_reference(x, wq, bq, wk, bk, wv, bv, gamma)
    assert out.shape == (B, C, H, W)
    err = float(jnp.max(jnp.abs(out - ref)))
    assert jnp.allclose(out, ref, rtol=2e-3, atol=2e-3), (
        f"mismatch vs reference, max abs err = {err}")

    print("KERNEL_OK")
</pallas_src>

<mosaic_0001>
module attributes {stable_mosaic.version = 11 : i64} {
  func.func @_spat_attn_kernel(%arg0: i32, %arg1: i32, %arg2: memref<1x32x256xbf16, #tpu.memory_space<vmem>>, %arg3: memref<1x48x256xbf16, #tpu.memory_space<vmem>>, %arg4: memref<1x32x256xbf16, #tpu.memory_space<vmem>>, %arg5: memref<1x32x256xf32, #tpu.memory_space<vmem>>, %arg6: memref<1x32x256xf32, #tpu.memory_space<vmem>>) attributes {dimension_semantics = [#tpu.dimension_semantics<parallel>, #tpu.dimension_semantics<parallel>], iteration_bounds = array<i64: 2, 1>, scalar_prefetch = 0 : i64, scratch_operands = 0 : i64, tpu.core_type = #tpu.core_type<tc>, window_params = [{transform_indices = @transform_0, window_bounds = array<i64: 1, 32, 256>}, {transform_indices = @transform_1, window_bounds = array<i64: 1, 48, 256>}, {transform_indices = @transform_2, window_bounds = array<i64: 1, 32, 256>}, {transform_indices = @transform_3, window_bounds = array<i64: 1, 32, 256>}, {transform_indices = @transform_4, window_bounds = array<i64: 1, 32, 256>}]} {
    %c0 = arith.constant 0 : index
    %c0_0 = arith.constant 0 : index
    %c0_1 = arith.constant 0 : index
    %0 = vector.load %arg2[%c0, %c0_0, %c0_1] : memref<1x32x256xbf16, #tpu.memory_space<vmem>>, vector<1x32x256xbf16>
    %1 = vector.shape_cast %0 : vector<1x32x256xbf16> to vector<32x256xbf16>
    %c0_2 = arith.constant 0 : index
    %c0_3 = arith.constant 0 : index
    %c0_4 = arith.constant 0 : index
    %2 = vector.load %arg4[%c0_2, %c0_3, %c0_4] : memref<1x32x256xbf16, #tpu.memory_space<vmem>>, vector<1x32x256xbf16>
    %3 = vector.shape_cast %2 : vector<1x32x256xbf16> to vector<32x256xbf16>
    %cst = arith.constant dense<0.000000e+00> : vector<256x256xf32>
    %4 = tpu.matmul %1, %3, %cst {dimension_numbers = #tpu.dot_dimension_numbers<[0], [0], [1], [1], [0, 1, 1, 1], [], []>} : vector<32x256xbf16>, vector<32x256xbf16>, vector<256x256xf32> -> vector<256x256xf32>
    %cst_5 = arith.constant dense<0xFF800000> : vector<256xf32>
    %5 = vector.multi_reduction <maximumf>, %4, %cst_5 [0] : vector<256x256xf32> to vector<256xf32>
    %6 = vector.shape_cast %5 : vector<256xf32> to vector<1x256xf32>
    %7 = vector.broadcast %6 : vector<1x256xf32> to vector<256x256xf32>
    %8 = arith.subf %4, %7 : vector<256x256xf32>
    %9 = math.exp %8 : vector<256x256xf32>
    %10 = arith.truncf %9 : vector<256x256xf32> to vector<256x256xbf16>
    %c0_6 = arith.constant 0 : index
    %c0_7 = arith.constant 0 : index
    %c0_8 = arith.constant 0 : index
    %11 = vector.load %arg3[%c0_6, %c0_7, %c0_8] : memref<1x48x256xbf16, #tpu.memory_space<vmem>>, vector<1x48x256xbf16>
    %12 = vector.shape_cast %11 : vector<1x48x256xbf16> to vector<48x256xbf16>
    %cst_9 = arith.constant dense<0.000000e+00> : vector<48x256xf32>
    %13 = tpu.matmul %12, %10, %cst_9 {dimension_numbers = #tpu.dot_dimension_numbers<[1], [0], [0], [1], [0, 0, 1, 1], [], []>} : vector<48x256xbf16>, vector<256x256xbf16>, vector<48x256xf32> -> vector<48x256xf32>
    %14 = vector.extract_strided_slice %13 {offsets = [0, 0], sizes = [32, 256], strides = [1, 1]} : vector<48x256xf32> to vector<32x256xf32>
    %15 = vector.extract_strided_slice %13 {offsets = [32, 0], sizes = [1, 256], strides = [1, 1]} : vector<48x256xf32> to vector<1x256xf32>
    %16 = tpu.reciprocal %15 : vector<1x256xf32> -> vector<1x256xf32>
    %17 = vector.broadcast %16 : vector<1x256xf32> to vector<32x256xf32>
    %18 = arith.mulf %14, %17 : vector<32x256xf32>
    %c0_10 = arith.constant 0 : index
    %c0_11 = arith.constant 0 : index
    %c0_12 = arith.constant 0 : index
    %19 = vector.load %arg5[%c0_10, %c0_11, %c0_12] : memref<1x32x256xf32, #tpu.memory_space<vmem>>, vector<1x32x256xf32>
    %20 = vector.shape_cast %19 : vector<1x32x256xf32> to vector<32x256xf32>
    %21 = arith.addf %18, %20 : vector<32x256xf32>
    %c0_13 = arith.constant 0 : index
    %c0_14 = arith.constant 0 : index
    %c0_15 = arith.constant 0 : index
    %22 = vector.load %arg6[%c0_13, %c0_14, %c0_15] : memref<1x32x256xf32, #tpu.memory_space<vmem>>, vector<1x32x256xf32>
    %23 = vector.shape_cast %22 : vector<1x32x256xf32> to vector<32x256xf32>
    %24 = vector.shape_cast %21 : vector<32x256xf32> to vector<1x32x256xf32>
    tpu.vector_store %arg6[%c0_13, %c0_14, %c0_15], %24 {strides = array<i32>} : memref<1x32x256xf32, #tpu.memory_space<vmem>>, vector<1x32x256xf32>,
    return
  }
  func.func @transform_0(%arg0: i32, %arg1: i32) -> (i32, i32, i32) {
    %c0_i32 = arith.constant 0 : i32
    %c0_i32_0 = arith.constant 0 : i32
    %c0_i32_1 = arith.constant 0 : i32
    return %arg0, %c0_i32, %c0_i32_0 : i32, i32, i32
  }
  func.func @transform_1(%arg0: i32, %arg1: i32) -> (i32, i32, i32) {
    %c0_i32 = arith.constant 0 : i32
    %c0_i32_0 = arith.constant 0 : i32
    %c0_i32_1 = arith.constant 0 : i32
    return %arg0, %c0_i32, %c0_i32_0 : i32, i32, i32
  }
  func.func @transform_2(%arg0: i32, %arg1: i32) -> (i32, i32, i32) {
    %c0_i32 = arith.constant 0 : i32
    %c0_i32_0 = arith.constant 0 : i32
    return %arg0, %c0_i32, %arg1 : i32, i32, i32
  }
  func.func @transform_3(%arg0: i32, %arg1: i32) -> (i32, i32, i32) {
    %c0_i32 = arith.constant 0 : i32
    %c0_i32_0 = arith.constant 0 : i32
    return %arg0, %c0_i32, %arg1 : i32, i32, i32
  }
  func.func @transform_4(%arg0: i32, %arg1: i32) -> (i32, i32, i32) {
    %c0_i32 = arith.constant 0 : i32
    %c0_i32_0 = arith.constant 0 : i32
    return %arg0, %c0_i32, %arg1 : i32, i32, i32
  }
}

</mosaic_0001>

<bundles_post_ra>
// kernel: tpu_custom_call.1
= control target key start
LH: loop header
LB: loop body
LE: loop exit
PB: predicated region body
PF: predicated region fallthrough
CT: control target
= control target key end

     0   :  { %s2723_s0 = inlined_call_operand.hbm [shape: bf16[2,32,256], index: 0, kind: input, shape index: {}]   ;;  %s2724_s1 = inlined_call_operand.hbm [shape: bf16[2,48,256], index: 1, kind: input, shape index: {}]   ;;  %s2725_s2 = inlined_call_operand.hbm [shape: bf16[2,32,256], index: 2, kind: input, shape index: {}]   ;;  %s2726_s3 = inlined_call_operand.hbm [shape: f32[2,32,256], index: 3, kind: input, shape index: {}]   ;;  %s2727_s4 = inlined_call_operand.hbm [shape: f32[2,32,256], index: 4, kind: output, shape index: {}]  }
   0x1   :  { %2788 = sst [smem:[#allocation48_spill]] %s2723_s0 }
   0x2   :  { %2789 = sst [smem:[#allocation49_spill]] %s2724_s1 }
   0x3   :  { %9 = vsyncpa [#allocation3], 0 }
   0x4   :  { %11 = vsyncpa [#allocation3 + $0x1], 0 }
   0x5   :  { %12 = vsyncpa [#allocation6], 0 }
   0x6   :  { %14 = vsyncpa [#allocation6 + $0x1], 0 }
   0x7   :  { %15 = vsyncpa [#allocation9], 0 }
   0x8   :  { %17 = vsyncpa [#allocation9 + $0x1], 0 }
   0x9   :  { %18 = vsyncpa [#allocation4], 0 }
   0xa   :  { %20 = vsyncpa [#allocation4 + $0x1], 0  ;;  %s1837_s15 = smov 0   ;;  %s1839_s16 = smov 0  }
   0xb   :  { %s1841_s17 = smov 0   ;;  %s1843_s18 = smov 0  }
   0xc   :  { %s1845_s19 = smov 0   ;;  %s1847_s20 = smov 0  }
   0xd LB: > { %2790 = sst [smem:[#allocation15_spill]] %s1786_s17  ;;  %s1868_s21 = sadd.s32 4294967295, %s1798_s20   ;;  %s1798_s20 = sphi %s1847_s20, %s26_s20   ;;  %s1794_s19 = sphi %s1845_s19, %s2936_s19   ;;  %s1790_s18 = sphi %s1843_s18, %s2935_s18   ;;  %s1786_s17 = sphi %s1841_s17, %s2931_s17   ;;  %s1782_s16 = sphi %s1839_s16, %s2934_s16   ;;  %s1778_s15 = sphi %s1837_s15, %s2933_s15  }
   0xe   : > { %2791 = sst [smem:[#allocation16_spill]] %s1798_s20  ;;  %s1291_s22 = sadd.s32 4294967294, %s1798_s20  }
   0xf   : > { %s38_s23 = sadd.s32 1, %s1794_s19  ;;  %s45_s24 = sadd.s32 1, %s1786_s17 }
  0x10   : > { %p40_p0 = scmp.ge.s32.totalorder %s38_s23, 2  ;;  %p52_p1 = scmp.ne.s32.totalorder %s1786_s17, %s1782_s16 }
  0x11   : > { %p53_p2 = scmp.eq.s32.totalorder %s1798_s20, 0  ;;  %p58_p3 = scmp.ne.s32.totalorder %s1782_s16, %s1778_s15 }
  0x12   : > { %s2938_s23 = smov (%p40_p0, %s38_s23), 0  ;;  %p59_p5 = scmp.eq.s32.totalorder %s1868_s21, 0 }
  0x13   : > { %2792 = sst [smem:[#allocation17_spill]] %s2938_s23  ;;  %p1880_p4 = por %p53_p2, %p52_p1 }
  0x14   : > { %s42_s26 = ssub.s32 %s1794_s19, %s2938_s23  ;;  %p166_p6 = scmp.eq.s32.totalorder %s1868_s21, 1 }
  0x15   : > { %p43_p7 = scmp.eq.s32.totalorder %s42_s26, 0  ;;  %p1888_p8 = por %p59_p5, %p58_p3 }
  0x16   : > { %p1892_p9 = por %p166_p6, %p52_p1  ;;  %p172_p10 = scmp.eq.s32.totalorder %s1291_s22, 1 }
  0x17   : > { %s2794_s27 = scalar_select %p1888_p8, 1, 0 }
  0x18   : > { %s2795_s28 = scalar_select %p1892_p9, 1, 0 }
  0x19   : > { %s1897_s29 = scalar_select %p43_p7, %s1786_s17, %s45_s24  }
  0x1a   : > { %p1899_p11 = por %p172_p10, %p58_p3  ;;  %p1378_p13 = scmp.lt.s32.totalorder %s1798_s20, 2 }
  0x1b   : > { %2796 = sst [smem:[#allocation18_spill]] %s1897_s29  ;;  %s1906_s5 = sand.u32 1, %s1786_s17  }
  0x1c   : > { %s2797_s30 = scalar_select %p1899_p11, 1, 0 }
  0x1d   : > { %p1910_p0 = pnand %p1378_p13, %p1880_p4  ;;  %s213_s7 = sand.u32 1, %s1798_s20  }
  0x1e   : > { %2798 = sst [smem:[#allocation19_spill]] %s2797_s30  ;;  %s1348_s8 = smul.u32 48, %s1906_s5 }
  0x1f   : > { %s1349_s9 = smul.u32 768, %s1794_s19  ;;  %s2800_s1 = sld [smem:[#allocation49_spill]] }
  0x20   : > { %s217_s13 = scalar_lea.vmem [#allocation5], %s1348_s8  ;;  %s1926_s22 = scalar_lea.sflag [#allocation6], %s213_s7 }
  0x21   : > { %s224_s14 = sshll.u32 %s217_s13, 4  ;;  %p1932_p4 = pneg %p1910_p0  ;;  %s1923_s14 = int_to_ptr.vmem [resolvable:$true] %s224_s14 }
  0x25   : > { %s1921_s12 = scalar_lea.hbm %s2800_s1, %s1349_s9  ;;  %s1593_s8 = scalar_lea.hbm %s2800_s1, 1536 }
  0x26   : > { %s1588_s24 = scalar_lea.hbm %s1921_s12, 768  ;;  %p1594_p7 = scmp.lt.u32.totalorder %s1921_s12, %s2800_s1 }
  0x27   : > { %p1589_p3 = scmp.ne.s32.totalorder %s1921_s12, %s1588_s24  ;;  %p1595_p10 = scmp.lt.u32.totalorder %s1593_s8, %s1588_s24 }
  0x28   : > { %p1597_p12 = scmp.lt.u32.totalorder %s1588_s24, %s1921_s12 }
  0x29   : > { %p1591_p5 = pnand %p1932_p4, %p1589_p3  ;;  %p1596_p13 = por %p1595_p10, %p1594_p7 }
  0x2b   : > { %p1592_p6 = pneg %p1591_p5  ;;  %p1598_p1 = por %p1597_p12, %p1596_p13 }
  0x2d   : > { %p1599_p2 = pnand %p1598_p1, %p1592_p6 }
  0x2f   : > { %1602 = shalt.err (!%p1599_p2)
}
  0x30   : > { %s1603_s7 = scalar_lea.vmem %s1923_s14, 768  ;;  %s1800_s13 = smov [#allocation5]  }
  0x31   : > { %p1604_p3 = scmp.ne.s32.totalorder %s1923_s14, %s1603_s7  ;;  %s1608_s26 = sshll.u32 %s1800_s13, 4  ;;  %s1609_s26 = int_to_ptr.vmem [resolvable:$false] %s1608_s26 }
  0x32   : > { %s1610_s9 = scalar_lea.vmem %s1609_s26, 1536  ;;  %p1611_p9 = scmp.lt.s32.totalorder %s1923_s14, %s1609_s26 }
  0x33   : > { %p1606_p5 = pnand %p1604_p3, %p1932_p4  ;;  %p1612_p8 = scmp.lt.s32.totalorder %s1610_s9, %s1603_s7 }
  0x35   : > { %p1607_p11 = pneg %p1606_p5  ;;  %p1613_p7 = por %p1612_p8, %p1611_p9 }
  0x37   : > { %p1614_p10 = pnand %p1613_p7, %p1607_p11 }
  0x39   : > { %1617 = shalt.err (!%p1614_p10)
}
  0x3a   : > { %s2730_s24 = smov 128   ;;  %s2732_s8 = smov 8  }
  0x3b   : > { %1367 = dma.hbm_to_vmem [thread:$0]  (!%p1910_p0), %s1921_s12, 768, %s1923_s14, %s1926_s22, %s2730_s24, %s2730_s24, %s2732_s8  }
  0x3c   : > { %p2802_p8 = scmp.lt.s32.totalorder %s1798_s20, 3  ;;  %p2803_p9 = scmp.ge.s32.totalorder %s1798_s20, 1 }
  0x3d   : > { %s2738_s11 = sshll.u32 %s1906_s5, 5  ;;  %s1344_s7 = sshll.u32 %s1794_s19, 9 }
  0x3e   : > { %p1963_p11 = pnand %p2803_p9, %p2802_p8  ;;  %s2805_s0 = sld [smem:[#allocation48_spill]] }
  0x3f   : > { %s196_s1 = scalar_lea.vmem [#allocation2], %s2738_s11  ;;  %s1981_s8 = scalar_lea.hbm %s2725_s2, %s1344_s7 }
  0x40   : > { %s2804_s10 = scalar_select %p1963_p11, 1, 0 }
  0x41   : > { %s203_s12 = sshll.u32 %s196_s1, 4  ;;  %s193_s23 = scalar_lea.sflag [#allocation3], %s1906_s5  ;;  %s1976_s12 = int_to_ptr.vmem [resolvable:$true] %s203_s12 }
  0x44   : > { %s1972_s9 = scalar_lea.hbm %s2805_s0, %s1344_s7  ;;  %s1623_s17 = scalar_lea.hbm %s2805_s0, 1024 }
  0x45   : > { %s1618_s29 = scalar_lea.hbm %s1972_s9, 512  ;;  %p1624_p6 = scmp.lt.u32.totalorder %s1972_s9, %s2805_s0 }
  0x46   : > { %p1619_p12 = scmp.ne.s32.totalorder %s1972_s9, %s1618_s29  ;;  %p1625_p13 = scmp.lt.u32.totalorder %s1623_s17, %s1618_s29 }
  0x47   : > { %p1627_p5 = scmp.lt.u32.totalorder %s1618_s29, %s1972_s9 }
  0x48   : > { %p1621_p1 = pnand %p1619_p12, %p1932_p4  ;;  %p1626_p3 = por %p1625_p13, %p1624_p6 }
  0x4a   : > { %p1622_p2 = pneg %p1621_p1  ;;  %p1628_p7 = por %p1627_p5, %p1626_p3 }
  0x4c   : > { %p1629_p10 = pnand %p1628_p7, %p1622_p2 }
  0x4e   : > { %1632 = shalt.err (!%p1629_p10)
}
  0x4f   : > { %s1633_s1 = scalar_lea.vmem %s1976_s12, 512  ;;  %s1803_s24 = smov [#allocation2]  }
  0x50   : > { %p1634_p8 = scmp.ne.s32.totalorder %s1976_s12, %s1633_s1  ;;  %s1638_s7 = sshll.u32 %s1803_s24, 4  ;;  %s1639_s7 = int_to_ptr.vmem [resolvable:$false] %s1638_s7 }
  0x51   : > { %s1640_s20 = scalar_lea.vmem %s1639_s7, 1024  ;;  %p1641_p1 = scmp.lt.s32.totalorder %s1976_s12, %s1639_s7 }
  0x52   : > { %p1636_p9 = pnand %p1634_p8, %p1932_p4  ;;  %p1642_p11 = scmp.lt.s32.totalorder %s1640_s20, %s1633_s1 }
  0x54   : > { %p1637_p12 = pneg %p1636_p9  ;;  %p1643_p6 = por %p1642_p11, %p1641_p1 }
  0x56   : > { %p1644_p13 = pnand %p1643_p6, %p1637_p12 }
  0x58   : > { %1647 = shalt.err (!%p1644_p13)
}
  0x59   : > { %s2806_s17 = smov 8   ;;  %s2807_s29 = smov 128  }
  0x5a   : > { %1364 = dma.hbm_to_vmem [thread:$0]  (!%p1910_p0), %s1972_s9, 512, %s1976_s12, %s193_s23, %s2807_s29, %s2807_s29, %s2806_s17  }
  0x5b   : > { %s2808_s11 = sshll.u32 %s1906_s5, 5  ;;  %s1301_s26 = sshll.u32 %s1906_s5, 6 }
  0x5c   : > { %s238_s14 = scalar_lea.vmem [#allocation7], %s2808_s11  ;;  %s1648_s1 = scalar_lea.hbm %s1981_s8, 512 }
  0x5d   : > { %s247_s13 = sshll.u32 %s238_s14, 4  ;;  %p1649_p11 = scmp.ne.s32.totalorder %s1981_s8, %s1648_s1  ;;  %s2012_s13 = int_to_ptr.vmem [resolvable:$true] %s247_s13 }
  0x5e   : > { %s1653_s20 = scalar_lea.hbm %s2725_s2, 1024  ;;  %p1654_p5 = scmp.lt.u32.totalorder %s1981_s8, %s2725_s2 }
  0x5f   : > { %p1651_p2 = pnand %p1649_p11, %p1932_p4  ;;  %p1655_p7 = scmp.lt.u32.totalorder %s1653_s20, %s1648_s1 }
  0x60   : > { %p1657_p8 = scmp.lt.u32.totalorder %s1648_s1, %s1981_s8 }
  0x61   : > { %p1652_p3 = pneg %p1651_p2  ;;  %p1656_p10 = por %p1655_p7, %p1654_p5 }
  0x63   : > { %p1658_p9 = por %p1657_p8, %p1656_p10 }
  0x65   : > { %p1659_p12 = pnand %p1658_p9, %p1652_p3 }
  0x67   : > { %1662 = shalt.err (!%p1659_p12)
}
  0x68   : > { %s1663_s23 = scalar_lea.vmem %s2012_s13, 512  ;;  %s1804_s9 = smov [#allocation7]  }
  0x69   : > { %p1664_p1 = scmp.ne.s32.totalorder %s2012_s13, %s1663_s23  ;;  %s1668_s12 = sshll.u32 %s1804_s9, 4  ;;  %s1669_s12 = int_to_ptr.vmem [resolvable:$false] %s1668_s12 }
  0x6a   : > { %s1670_s0 = scalar_lea.vmem %s1669_s12, 1024  ;;  %p1671_p11 = scmp.lt.s32.totalorder %s2012_s13, %s1669_s12 }
  0x6b   : > { %p1666_p6 = pnand %p1664_p1, %p1932_p4  ;;  %p1672_p2 = scmp.lt.s32.totalorder %s1670_s0, %s1663_s23 }
  0x6d   : > { %p1667_p13 = pneg %p1666_p6  ;;  %p1673_p5 = por %p1672_p2, %p1671_p11 }
  0x6f   : > { %p1674_p7 = pnand %p1673_p5, %p1667_p13 }
  0x71   : > { %1677 = shalt.err (!%p1674_p7)
}
  0x72   : > { %1370 = dma.hbm_to_vmem [thread:$0]  (!%p1910_p0), %s1981_s8, 512, %s2012_s13, %s1926_s22, %s2807_s29, %s2807_s29, %s2806_s17  }
  0x73   : > { %s1346_s30 = sshll.u32 %s1794_s19, 10  ;;  %s261_s24 = scalar_lea.vmem [#allocation8], %s1301_s26 }
  0x74   : > { %s2044_s1 = scalar_lea.hbm %s2726_s3, %s1346_s30  ;;  %s270_s7 = sshll.u32 %s261_s24, 4  ;;  %s2048_s7 = int_to_ptr.vmem [resolvable:$true] %s270_s7 }
  0x75   : > { %s258_s20 = scalar_lea.sflag [#allocation9], %s1906_s5  ;;  %s1678_s23 = scalar_lea.hbm %s2044_s1, 1024 }
  0x76   : > { %p1679_p3 = scmp.ne.s32.totalorder %s2044_s1, %s1678_s23  ;;  %s1683_s17 = scalar_lea.hbm %s2726_s3, 2048 }
  0x77   : > { %p1684_p9 = scmp.lt.u32.totalorder %s2044_s1, %s2726_s3  ;;  %p1685_p12 = scmp.lt.u32.totalorder %s1683_s17, %s1678_s23 }
  0x78   : > { %p1681_p10 = pnand %p1679_p3, %p1932_p4  ;;  %p1687_p6 = scmp.lt.u32.totalorder %s1678_s23, %s2044_s1 }
  0x79   : > { %p1686_p1 = por %p1685_p12, %p1684_p9 }
  0x7a   : > { %p1682_p8 = pneg %p1681_p10 }
  0x7b   : > { %p1688_p13 = por %p1687_p6, %p1686_p1 }
  0x7d   : > { %p1689_p11 = pnand %p1688_p13, %p1682_p8 }
  0x7f   : > { %1692 = shalt.err (!%p1689_p11)
}
  0x80   : > { %s1693_s26 = scalar_lea.vmem %s2048_s7, 1024  ;;  %s1805_s9 = smov [#allocation8]  }
  0x81   : > { %p1694_p2 = scmp.ne.s32.totalorder %s2048_s7, %s1693_s26  ;;  %s1698_s12 = sshll.u32 %s1805_s9, 4  ;;  %s1699_s12 = int_to_ptr.vmem [resolvable:$false] %s1698_s12 }
  0x82   : > { %s1700_s0 = scalar_lea.vmem %s1699_s12, 2048  ;;  %p1701_p3 = scmp.lt.s32.totalorder %s2048_s7, %s1699_s12 }
  0x83   : > { %p1696_p5 = pnand %p1694_p2, %p1932_p4  ;;  %p1702_p10 = scmp.lt.s32.totalorder %s1700_s0, %s1693_s26 }
  0x85   : > { %p1697_p7 = pneg %p1696_p5  ;;  %p1703_p9 = por %p1702_p10, %p1701_p3 }
  0x87   : > { %p1704_p12 = pnand %p1703_p9, %p1697_p7 }
  0x89   : > { %1707 = shalt.err (!%p1704_p12)
}
  0x8a   : > { %s1806_s30 = smov 256   ;;  %s1807_s11 = smov 16  }
  0x8b   : > { %1373 = dma.hbm_to_vmem [thread:$0]  (!%p1910_p0), %s2044_s1, 1024, %s2048_s7, %s258_s20, %s1806_s30, %s1806_s30, %s1807_s11  }
  0x8c   : > { %p2809_p4 = scmp.ne.s32.totalorder %s2804_s10, 0 }
  0x8e   : > { %282 = sbr.rel (%p2809_p4) target bundleno = 971 (0x3cb), region = 36 }
  0x95   : > { %s2077_s25 = sand.u32 1, %s1782_s16   ;;  %p2810_p8 = scmp.ne.s32.totalorder %s2794_s27, 0 }
  0x96   : > { %s1305_s14 = sshll.u32 %s2077_s25, 5  ;;  %s285_s24 = scalar_lea.sflag [#allocation3], %s2077_s25 }
  0x97   : > { %s288_s23 = scalar_lea.vmem [#allocation2], %s1305_s14 }
  0x98   : > { %1761 = dma.done.wait (%p2810_p8), %s285_s24, 512  }
  0x99   : > { %1763 = vsyncadd (%p2810_p8), %s285_s24, 4294966784  ;;  %s293_s5 = sand.u32 1, %s1868_s21   ;;  %s1350_s6 = smul.u32 48, %s2077_s25 }
  0x9a   : > { %s294_s10 = scalar_lea.sflag [#allocation6], %s293_s5 }
  0x9b   : > { %s2087_s1 = scalar_lea.vmem [#allocation5], %s1350_s6 }
  0x9c   : > { %1765 = dma.done.wait (%p2810_p8), %s294_s10, 1280  }
  0x9d   : > { %1767 = vsyncadd (%p2810_p8), %s294_s10, 4294966016  ;;  %s1307_s7 = sshll.u32 %s2077_s25, 6  ;;  %s306_s20 = scalar_lea.vmem [#allocation7], %s1305_s14 }
  0x9e   : > { %s312_s22 = scalar_lea.sflag [#allocation9], %s2077_s25  ;;  %s2097_s8 = scalar_lea.vmem [#allocation8], %s1307_s7 }
  0x9f   : > { %1769 = dma.done.wait (%p2810_p8), %s312_s22, 1024  }
  0xa0   : > { %1771 = vsyncadd (%p2810_p8), %s312_s22, 4294966272  ;;  %v1808_v0 = vmov 0   ;;  %v1435_v1 = vld [vmem:[%s288_s23] ss:$8 sps:$4 sm:$0xff]   ;;  %v1437_v2 = vld [vmem:[%s288_s23 + $0x10] ss:$8 sps:$4 sm:$0xff]  }
  0xa1   : > { %520 = vmatprep.mubr.bf16.mxu0 %v1808_v0  ;;  %387 = vxpose.xlu0.c.b16.start [1/2] (short) %v1435_v1, 128  ;;  %v1439_v3 = vld [vmem:[%s288_s23 + $0x4] ss:$8 sps:$4 sm:$0xff]   ;;  %v1440_v4 = vld [vmem:[%s288_s23 + $0x14] ss:$8 sps:$4 sm:$0xff]   ;;  %v1443_v6 = vld [vmem:[%s306_s20] ss:$8 sps:$4 sm:$0xff]  }
  0xa2   : > { %v1441_v5 = vld [vmem:[%s306_s20 + $0x4] ss:$8 sps:$4 sm:$0xff]   ;;  %403 = vxpose.xlu1.c.b16.start [1/2] (short) %v1439_v3, 128  ;;  %v1444_v7 = vld [vmem:[%s306_s20 + $0x14] ss:$8 sps:$4 sm:$0xff]   ;;  %v1446_v8 = vld [vmem:[%s306_s20 + $0x10] ss:$8 sps:$4 sm:$0xff]  }
  0xa3   : > { %488 = vmatprep.subr.bf16.mxu0 %v1441_v5  ;;  %vm439_vm0 = vcmask 261120   ;;  %s1347_s21 = sshll.u32 %s1790_s18, 10  ;;  %s354_s27 = scalar_lea.vmem [#allocation10], %s1307_s7 }
  0xa4   : > { %489 = vmatpush1.bf16.msra.mxu0 %v1443_v6  ;;  %s1134_s17 = sshll.u32 %s354_s27, 4  ;;  %s2672_s13 = scalar_lea.hbm %s2727_s4, %s1347_s21  ;;  %s2674_s17 = int_to_ptr.vmem [resolvable:$true] %s1134_s17 }
  0xa5   : > { %388 = vxpose.xlu0.c.b16.end [2/2] (short) %v1437_v2, 128  ;;  %490 = vmatprep.subr.bf16.mxu0 %v1444_v7  ;;  %s1119_s26 = scalar_lea.sflag [#allocation4], %s2077_s25  ;;  %s1708_s9 = scalar_lea.vmem %s2674_s17, 1024 }
  0xa6   : > { %404 = vxpose.xlu1.c.b16.end [2/2] (short) %v1440_v4, 128  ;;  %p1709_p0 = scmp.ne.s32.totalorder %s2674_s17, %s1708_s9  ;;  %p2925_p1 = scmp.ne.s32.totalorder %s2795_s28, 0 }
  0xa7   : > { %s1809_s12 = smov [#allocation10]  }
  0xa8   : > { %491 = vmatpush1.bf16.msra.mxu0 %v1446_v8  ;;  %p1710_p6 = pnand %p1709_p0, %p2925_p1  ;;  %s1712_s0 = sshll.u32 %s1809_s12, 4  ;;  %s1713_s0 = int_to_ptr.vmem [resolvable:$false] %s1712_s0 }
  0xa9   : > { %s1714_s30 = scalar_lea.vmem %s1713_s0, 2048  ;;  %p1715_p11 = scmp.lt.s32.totalorder %s2674_s17, %s1713_s0 }
  0xaa   : > { %p1711_p13 = pneg %p1710_p6  ;;  %p1716_p2 = scmp.lt.s32.totalorder %s1714_s30, %s1708_s9 }
  0xac   : > { %p1717_p5 = por %p1716_p2, %p1715_p11 }
  0xae   : > { %p1718_p7 = pnand %p1717_p5, %p1711_p13 }
 0x107   : > { %v395_v9 = vpop.trf.xlu0 }
 0x108   : > { %1317 = vmatmul.mubr.msk.bf16.vlgmr.msra.gmra.mrb[0].mxu0 %vm439_vm0, %v395_v9  ;;  %v411_v17 = vpop.trf.xlu1 }
 0x109   : > { %530 = vmatprep.mubr.bf16.mxu0 %v1808_v0 }
 0x10b   : > { %v396_v10 = vpop.trf.xlu0 }
 0x10c   : > { %v412_v18 = vpop.trf.xlu1 }
 0x10f   : > { %v397_v11 = vpop.trf.xlu0 }
 0x110   : > { %1318 = vmatmul.mubr.msk.bf16.gmra.mrb[4].mxu0 %vm439_vm0, %v396_v10  ;;  %v413_v19 = vpop.trf.xlu1 }
 0x111   : > { %540 = vmatprep.mubr.bf16.mxu0 %v1808_v0 }
 0x113   : > { %v398_v12 = vpop.trf.xlu0 }
 0x114   : > { %v414_v20 = vpop.trf.xlu1 }
 0x117   : > { %v399_v13 = vpop.trf.xlu0 }
 0x118   : > { %1319 = vmatmul.mubr.msk.bf16.gmra.mrb[8].mxu0 %vm439_vm0, %v397_v11  ;;  %v415_v21 = vpop.trf.xlu1 }
 0x119   : > { %550 = vmatprep.mubr.bf16.mxu0 %v1808_v0 }
 0x11b   : > { %v400_v14 = vpop.trf.xlu0 }
 0x11c   : > { %v416_v22 = vpop.trf.xlu1 }
 0x11f   : > { %v401_v15 = vpop.trf.xlu0 }
 0x120   : > { %1320 = vmatmul.mubr.msk.bf16.gmra.mrb[12].mxu0 %vm439_vm0, %v398_v12  ;;  %v417_v23 = vpop.trf.xlu1 }
 0x121   : > { %560 = vmatprep.mubr.bf16.mxu0 %v1808_v0 }
 0x123   : > { %v402_v16 = vpop.trf.xlu0 }
 0x124   : > { %v418_v24 = vpop.trf.xlu1 }
 0x128   : > { %1321 = vmatmul.mubr.msk.bf16.gmra.mrb[16].mxu0 %vm439_vm0, %v399_v13 }
 0x129   : > { %570 = vmatprep.mubr.bf16.mxu0 %v1808_v0 }
 0x130   : > { %1322 = vmatmul.mubr.msk.bf16.gmra.mrb[20].mxu0 %vm439_vm0, %v400_v14 }
 0x131   : > { %580 = vmatprep.mubr.bf16.mxu0 %v1808_v0 }
 0x138   : > { %1323 = vmatmul.mubr.msk.bf16.gmra.mrb[24].mxu0 %vm439_vm0, %v401_v15 }
 0x139   : > { %590 = vmatprep.mubr.bf16.mxu0 %v1808_v0 }
 0x140   : > { %1324 = vmatmul.mubr.msk.bf16.gmra.mrb[28].mxu0 %vm439_vm0, %v402_v16 }
 0x141   : > { %600 = vmatprep.mubr.bf16.mxu0 %v1808_v0 }
 0x148   : > { %1325 = vmatmul.mubr.msk.bf16.gmra.mrb[32].mxu0 %vm439_vm0, %v411_v17 }
 0x149   : > { %610 = vmatprep.mubr.bf16.mxu0 %v1808_v0 }
 0x150   : > { %1326 = vmatmul.mubr.msk.bf16.gmra.mrb[36].mxu0 %vm439_vm0, %v412_v18 }
 0x151   : > { %620 = vmatprep.mubr.bf16.mxu0 %v1808_v0 }
 0x158   : > { %1327 = vmatmul.mubr.msk.bf16.gmra.mrb[40].mxu0 %vm439_vm0, %v413_v19 }
 0x159   : > { %630 = vmatprep.mubr.bf16.mxu0 %v1808_v0 }
 0x160   : > { %1328 = vmatmul.mubr.msk.bf16.gmra.mrb[44].mxu0 %vm439_vm0, %v414_v20 }
 0x161   : > { %640 = vmatprep.mubr.bf16.mxu0 %v1808_v0 }
 0x168   : > { %1329 = vmatmul.mubr.msk.bf16.gmra.mrb[48].mxu0 %vm439_vm0, %v415_v21 }
 0x169   : > { %650 = vmatprep.mubr.bf16.mxu0 %v1808_v0 }
 0x170   : > { %1330 = vmatmul.mubr.msk.bf16.gmra.mrb[52].mxu0 %vm439_vm0, %v416_v22 }
 0x171   : > { %660 = vmatprep.mubr.bf16.mxu0 %v1808_v0 }
 0x178   : > { %1331 = vmatmul.mubr.msk.bf16.gmra.mrb[56].mxu0 %vm439_vm0, %v417_v23 }
 0x179   : > { %670 = vmatprep.mubr.bf16.mxu0 %v1808_v0 }
 0x180   : > { %1332 = vmatmul.mubr.msk.bf16.gmra.mrb[60].mxu0 %vm439_vm0, %v418_v24 }
 0x1db   : > { %v2135_v25 = vpop.f32.mrb[0].mxu0 }
 0x1dc   : > { %v2137_v26 = vpop.f32.mrb[1].mxu0 }
 0x1dd   : > { %v2139_v27 = vpop.f32.mrb[2].mxu0 }
 0x1de   : > { %v2141_v28 = vpop.f32.mrb[3].mxu0 }
 0x1e3   : > { %v2143_v29 = vpop.f32.mrb[4].mxu0 }
 0x1e4   : > { %v681_v30 = vmax.f32 %v2135_v25, %v2143_v29  ;;  %v2147_v31 = vpop.f32.mrb[5].mxu0 }
 0x1e5   : > { %v718_v32 = vmax.f32 %v2137_v26, %v2147_v31  ;;  %v2151_v33 = vpop.f32.mrb[6].mxu0 }
 0x1e6   : > { %v682_v34 = vmax.f32 %v2139_v27, %v2151_v33  ;;  %v2155_v35 = vpop.f32.mrb[7].mxu0 }
 0x1e7   : > { %v719_v36 = vmax.f32 %v2141_v28, %v2155_v35 }
 0x1eb   : > { %v2159_v37 = vpop.f32.mrb[8].mxu0 }
 0x1ec   : > { %v683_v38 = vmax.f32 %v681_v30, %v2159_v37  ;;  %v2162_v39 = vpop.f32.mrb[9].mxu0 }
 0x1ed   : > { %v720_v40 = vmax.f32 %v718_v32, %v2162_v39  ;;  %v2165_v41 = vpop.f32.mrb[10].mxu0 }
 0x1ee   : > { %v684_v42 = vmax.f32 %v682_v34, %v2165_v41  ;;  %v2168_v43 = vpop.f32.mrb[11].mxu0 }
 0x1ef   : > { %v721_v44 = vmax.f32 %v719_v36, %v2168_v43 }
 0x1f3   : > { %v2171_v45 = vpop.f32.mrb[12].mxu0 }
 0x1f4   : > { %v685_v46 = vmax.f32 %v683_v38, %v2171_v45  ;;  %v2174_v47 = vpop.f32.mrb[13].mxu0 }
 0x1f5   : > { %v722_v48 = vmax.f32 %v720_v40, %v2174_v47  ;;  %v2177_v49 = vpop.f32.mrb[14].mxu0 }
 0x1f6   : > { %v686_v50 = vmax.f32 %v684_v42, %v2177_v49  ;;  %v2180_v51 = vpop.f32.mrb[15].mxu0 }
 0x1f7   : > { %v723_v52 = vmax.f32 %v721_v44, %v2180_v51 }
 0x1fb   : > { %v2183_v53 = vpop.f32.mrb[16].mxu0 }
 0x1fc   : > { %v687_v54 = vmax.f32 %v685_v46, %v2183_v53  ;;  %v2186_v55 = vpop.f32.mrb[17].mxu0 }
 0x1fd   : > { %v724_v56 = vmax.f32 %v722_v48, %v2186_v55  ;;  %v2189_v57 = vpop.f32.mrb[18].mxu0 }
 0x1fe   : > { %v688_v58 = vmax.f32 %v686_v50, %v2189_v57  ;;  %v2192_v59 = vpop.f32.mrb[19].mxu0 }
 0x1ff   : > { %v725_v60 = vmax.f32 %v723_v52, %v2192_v59 }
 0x203   : > { %v2195_v61 = vpop.f32.mrb[20].mxu0 }
 0x204   : > { %v689_v62 = vmax.f32 %v687_v54, %v2195_v61  ;;  %v2198_v63 = vpop.f32.mrb[21].mxu0 }
 0x205   : > { %2811 = vst [vmem:[#allocation20_spill] sm:$0xff] %v2198_v63  ;;  %v726_v0 = vmax.f32 %v724_v56, %v2198_v63  ;;  %v2201_v1 = vpop.f32.mrb[22].mxu0 }
 0x206   : > { %v690_v2 = vmax.f32 %v688_v58, %v2201_v1  ;;  %v2204_v3 = vpop.f32.mrb[23].mxu0 }
 0x207   : > { %2812 = vst [vmem:[#allocation21_spill] sm:$0xff] %v2204_v3  ;;  %v727_v4 = vmax.f32 %v725_v60, %v2204_v3 }
 0x20b   : > { %v2207_v5 = vpop.f32.mrb[24].mxu0 }
 0x20c   : > { %v691_v6 = vmax.f32 %v689_v62, %v2207_v5  ;;  %v2210_v7 = vpop.f32.mrb[25].mxu0 }
 0x20d   : > { %2813 = vst [vmem:[#allocation22_spill] sm:$0xff] %v2210_v7  ;;  %v728_v8 = vmax.f32 %v726_v0, %v2210_v7  ;;  %v2213_v9 = vpop.f32.mrb[26].mxu0 }
 0x20e   : > { %v692_v10 = vmax.f32 %v690_v2, %v2213_v9  ;;  %v2216_v11 = vpop.f32.mrb[27].mxu0 }
 0x20f   : > { %2814 = vst [vmem:[#allocation23_spill] sm:$0xff] %v2216_v11  ;;  %v729_v12 = vmax.f32 %v727_v4, %v2216_v11 }
 0x213   : > { %v2219_v13 = vpop.f32.mrb[28].mxu0 }
 0x214   : > { %v693_v14 = vmax.f32 %v691_v6, %v2219_v13  ;;  %v2222_v15 = vpop.f32.mrb[29].mxu0 }
 0x215   : > { %2815 = vst [vmem:[#allocation24_spill] sm:$0xff] %v2222_v15  ;;  %v730_v16 = vmax.f32 %v728_v8, %v2222_v15  ;;  %v2225_v17 = vpop.f32.mrb[30].mxu0 }
 0x216   : > { %v694_v18 = vmax.f32 %v692_v10, %v2225_v17  ;;  %v2228_v19 = vpop.f32.mrb[31].mxu0 }
 0x217   : > { %2816 = vst [vmem:[#allocation25_spill] sm:$0xff] %v2228_v19  ;;  %v731_v20 = vmax.f32 %v729_v12, %v2228_v19 }
 0x21b   : > { %v2231_v21 = vpop.f32.mrb[32].mxu0 }
 0x21c   : > { %v695_v22 = vmax.f32 %v693_v14, %v2231_v21  ;;  %v2234_v23 = vpop.f32.mrb[33].mxu0 }
 0x21d   : > { %2817 = vst [vmem:[#allocation26_spill] sm:$0xff] %v2234_v23  ;;  %v732_v24 = vmax.f32 %v730_v16, %v2234_v23  ;;  %v2237_v30 = vpop.f32.mrb[34].mxu0 }
 0x21e   : > { %v696_v32 = vmax.f32 %v694_v18, %v2237_v30  ;;  %v2240_v34 = vpop.f32.mrb[35].mxu0 }
 0x21f   : > { %2818 = vst [vmem:[#allocation27_spill] sm:$0xff] %v2240_v34  ;;  %v733_v36 = vmax.f32 %v731_v20, %v2240_v34 }
 0x223   : > { %v2243_v38 = vpop.f32.mrb[36].mxu0 }
 0x224   : > { %v697_v40 = vmax.f32 %v695_v22, %v2243_v38  ;;  %v2246_v42 = vpop.f32.mrb[37].mxu0 }
 0x225   : > { %2819 = vst [vmem:[#allocation28_spill] sm:$0xff] %v2246_v42  ;;  %v734_v44 = vmax.f32 %v732_v24, %v2246_v42  ;;  %v2249_v46 = vpop.f32.mrb[38].mxu0 }
 0x226   : > { %v698_v48 = vmax.f32 %v696_v32, %v2249_v46  ;;  %v2252_v50 = vpop.f32.mrb[39].mxu0 }
 0x227   : > { %2820 = vst [vmem:[#allocation29_spill] sm:$0xff] %v2252_v50  ;;  %v735_v52 = vmax.f32 %v733_v36, %v2252_v50 }
 0x22b   : > { %v2255_v54 = vpop.f32.mrb[40].mxu0 }
 0x22c   : > { %v699_v56 = vmax.f32 %v697_v40, %v2255_v54  ;;  %v2258_v58 = vpop.f32.mrb[41].mxu0 }
 0x22d   : > { %2821 = vst [vmem:[#allocation30_spill] sm:$0xff] %v2258_v58  ;;  %v736_v60 = vmax.f32 %v734_v44, %v2258_v58  ;;  %v2261_v62 = vpop.f32.mrb[42].mxu0 }
 0x22e   : > { %v700_v0 = vmax.f32 %v698_v48, %v2261_v62  ;;  %v2264_v2 = vpop.f32.mrb[43].mxu0 }
 0x22f   : > { %2822 = vst [vmem:[#allocation31_spill] sm:$0xff] %v2264_v2  ;;  %v737_v4 = vmax.f32 %v735_v52, %v2264_v2  ;;  %v1449_v2 = vld [vmem:[%s2087_s1 + $0x4] ss:$8 sps:$4 sm:$0xff]  }
 0x230   : > { %1047 = vmatprep.mubr.bf16.mxu1 %v1449_v2 }
 0x233   : > { %v2267_v6 = vpop.f32.mrb[44].mxu0 }
 0x234   : > { %v701_v8 = vmax.f32 %v699_v56, %v2267_v6  ;;  %v2270_v10 = vpop.f32.mrb[45].mxu0 }
 0x235   : > { %2823 = vst [vmem:[#allocation32_spill] sm:$0xff] %v2270_v10  ;;  %v738_v12 = vmax.f32 %v736_v60, %v2270_v10  ;;  %v2273_v14 = vpop.f32.mrb[46].mxu0 }
 0x236   : > { %2824 = vst [vmem:[#allocation33_spill] sm:$0xff] %v2273_v14  ;;  %v702_v16 = vmax.f32 %v700_v0, %v2273_v14  ;;  %v2276_v18 = vpop.f32.mrb[47].mxu0 }
 0x237   : > { %2825 = vst [vmem:[#allocation34_spill] sm:$0xff] %v2276_v18  ;;  %v739_v20 = vmax.f32 %v737_v4, %v2276_v18 }
 0x23b   : > { %v2279_v22 = vpop.f32.mrb[48].mxu0 }
 0x23c   : > { %2826 = vst [vmem:[#allocation35_spill] sm:$0xff] %v2279_v22  ;;  %v703_v24 = vmax.f32 %v701_v8, %v2279_v22  ;;  %v2282_v32 = vpop.f32.mrb[49].mxu0 }
 0x23d   : > { %2827 = vst [vmem:[#allocation36_spill] sm:$0xff] %v2282_v32  ;;  %v740_v36 = vmax.f32 %v738_v12, %v2282_v32  ;;  %v2285_v40 = vpop.f32.mrb[50].mxu0 }
 0x23e   : > { %2828 = vst [vmem:[#allocation37_spill] sm:$0xff] %v2285_v40  ;;  %v704_v44 = vmax.f32 %v702_v16, %v2285_v40  ;;  %v2288_v48 = vpop.f32.mrb[51].mxu0 }
 0x23f   : > { %2829 = vst [vmem:[#allocation38_spill] sm:$0xff] %v2288_v48  ;;  %v741_v52 = vmax.f32 %v739_v20, %v2288_v48 }
 0x243   : > { %v2291_v56 = vpop.f32.mrb[52].mxu0 }
 0x244   : > { %2830 = vst [vmem:[#allocation39_spill] sm:$0xff] %v2291_v56  ;;  %v705_v60 = vmax.f32 %v703_v24, %v2291_v56  ;;  %v2294_v0 = vpop.f32.mrb[53].mxu0 }
 0x245   : > { %2831 = vst [vmem:[#allocation40_spill] sm:$0xff] %v2294_v0  ;;  %v742_v4 = vmax.f32 %v740_v36, %v2294_v0  ;;  %v2297_v8 = vpop.f32.mrb[54].mxu0 }
 0x246   : > { %2832 = vst [vmem:[#allocation41_spill] sm:$0xff] %v2297_v8  ;;  %v706_v12 = vmax.f32 %v704_v44, %v2297_v8  ;;  %v2300_v32 = vpop.f32.mrb[55].mxu0 }
 0x247   : > { %2833 = vst [vmem:[#allocation42_spill] sm:$0xff] %v2300_v32  ;;  %v743_v16 = vmax.f32 %v741_v52, %v2300_v32 }
 0x24b   : > { %v2303_v18 = vpop.f32.mrb[56].mxu0 }
 0x24c   : > { %2834 = vst [vmem:[#allocation43_spill] sm:$0xff] %v2303_v18  ;;  %v707_v20 = vmax.f32 %v705_v60, %v2303_v18  ;;  %v2306_v48 = vpop.f32.mrb[57].mxu0 }
 0x24d   : > { %2835 = vst [vmem:[#allocation44_spill] sm:$0xff] %v2306_v48  ;;  %v744_v24 = vmax.f32 %v742_v4, %v2306_v48  ;;  %v2309_v10 = vpop.f32.mrb[58].mxu0 }
 0x24e   : > { %2836 = vst [vmem:[#allocation45_spill] sm:$0xff] %v2309_v10  ;;  %v708_v36 = vmax.f32 %v706_v12, %v2309_v10  ;;  %v2312_v0 = vpop.f32.mrb[59].mxu0 }
 0x24f   : > { %2837 = vst [vmem:[#allocation46_spill] sm:$0xff] %v2312_v0  ;;  %v745_v44 = vmax.f32 %v743_v16, %v2312_v0 }
 0x253   : > { %v2316_v58 = vpop.f32.mrb[60].mxu0 }
 0x254   : > { %2838 = vst [vmem:[#allocation47_spill] sm:$0xff] %v2316_v58  ;;  %v709_v52 = vmax.f32 %v707_v20, %v2316_v58  ;;  %v2319_v32 = vpop.f32.mrb[61].mxu0  ;;  %v2857_v58 = vld [vmem:[#allocation44_spill] sm:$0xff] }
 0x255   : > { %v746_v60 = vmax.f32 %v744_v24, %v2319_v32  ;;  %v676_v50 = vpop.f32.mrb[62].mxu0 }
 0x256   : > { %v710_v4 = vmax.f32 %v708_v36, %v676_v50  ;;  %v678_v48 = vpop.f32.mrb[63].mxu0  ;;  %v2858_v10 = vld [vmem:[#allocation46_spill] sm:$0xff] }
 0x257   : > { %v747_v42 = vmax.f32 %v745_v44, %v678_v48  ;;  %v2846_v44 = vld [vmem:[#allocation27_spill] sm:$0xff] }
 0x258   : > { %v711_v34 = vmax.f32 %v709_v52, %v710_v4 }
 0x259   : > { %v748_v12 = vmax.f32 %v746_v60, %v747_v42 }
 0x25a   : > { %v712_v23 = vrot.slane %v711_v34, 4 }
 0x25b   : > { %v749_v19 = vrot.slane %v748_v12, 4 }
 0x25c   : > { %v713_v15 = vmax.f32 %v711_v34, %v712_v23  ;;  %v2848_v34 = vld [vmem:[#allocation29_spill] sm:$0xff]  ;;  %v2853_v23 = vld [vmem:[#allocation36_spill] sm:$0xff] }
 0x25d   : > { %v750_v11 = vmax.f32 %v748_v12, %v749_v19  ;;  %v2852_v19 = vld [vmem:[#allocation34_spill] sm:$0xff] }
 0x25e   : > { %v714_v16 = vrot.slane %v713_v15, 2 }
 0x25f   : > { %v751_v2 = vrot.slane %v750_v11, 2 }
 0x260   : > { %v715_v0 = vmax.f32 %v713_v15, %v714_v16  ;;  %v2849_v15 = vld [vmem:[#allocation30_spill] sm:$0xff] }
 0x261   : > { %v752_v7 = vmax.f32 %v750_v11, %v751_v2 }
 0x262   : > { %v716_v3 = vrot.slane %v715_v0, 1 }
 0x263   : > { %v753_v63 = vrot.slane %v752_v7, 1 }
 0x264   : > { %v2322_v20 = vmax.f32 %v715_v0, %v716_v3  ;;  %v2850_v3 = vld [vmem:[#allocation31_spill] sm:$0xff] }
 0x265   : > { %v2359_v0 = vmax.f32 %v752_v7, %v753_v63 }
 0x266   : > { %v817_v24 = vsub.f32 %v676_v50, %v2322_v20  ;;  %v2859_v8 = vsub.f32 %v2135_v25, %v2322_v20  ;;  %v2860_v40 = vsub.f32 %v2139_v27, %v2322_v20  ;;  %v2861_v22 = vsub.f32 %v2143_v29, %v2322_v20 }
 0x267   : > { %v818_v7 = vsub.f32 %v678_v48, %v2359_v0  ;;  %v756_v60 = vsub.f32 %v2137_v26, %v2359_v0  ;;  %v758_v4 = vsub.f32 %v2141_v28, %v2359_v0  ;;  %v760_v12 = vsub.f32 %v2147_v31, %v2359_v0  ;;  %v2843_v26 = vld [vmem:[#allocation24_spill] sm:$0xff]  ;;  %v2844_v28 = vld [vmem:[#allocation25_spill] sm:$0xff]  ;;  %v2845_v31 = vld [vmem:[#allocation26_spill] sm:$0xff] }
 0x268   : > { %v762_v16 = vsub.f32 %v2155_v35, %v2359_v0  ;;  %v764_v2 = vsub.f32 %v2162_v39, %v2359_v0  ;;  %v943_v52 = vmul.f32 1.442695, %v817_v24  ;;  %v766_v63 = vsub.f32 %v2168_v43, %v2359_v0  ;;  %v2839_v35 = vld [vmem:[#allocation20_spill] sm:$0xff]  ;;  %v2840_v39 = vld [vmem:[#allocation21_spill] sm:$0xff]  ;;  %v2841_v43 = vld [vmem:[#allocation22_spill] sm:$0xff] }
 0x269   : > { %v768_v48 = vsub.f32 %v2174_v47, %v2359_v0  ;;  %v945_v50 = vmul.f32 1.442695, %v818_v7  ;;  %v2842_v47 = vld [vmem:[#allocation23_spill] sm:$0xff]  ;;  %v2847_v7 = vld [vmem:[#allocation28_spill] sm:$0xff]  ;;  %v2854_v24 = vld [vmem:[#allocation38_spill] sm:$0xff]  ;;  %v2862_v11 = vsub.f32 %v2151_v33, %v2322_v20  ;;  %v2864_v25 = vsub.f32 %v2165_v41, %v2322_v20 }
 0x26a   : > { %1456 = vpow2.f32 %v943_v52  ;;  %v819_v56 = vmul.f32 1.442695, %v2859_v8  ;;  %v823_v42 = vmul.f32 1.442695, %v2860_v40  ;;  %v827_v36 = vmul.f32 1.442695, %v2861_v22 }
 0x26b   : > { %1458 = vpow2.f32 %v945_v50  ;;  %v831_v14 = vmul.f32 1.442695, %v2862_v11  ;;  %v2863_v52 = vsub.f32 %v2159_v37, %v2322_v20  ;;  %v839_v8 = vmul.f32 1.442695, %v2864_v25 }
 0x26c   : > { %1460 = vpow2.f32 %v819_v56  ;;  %v2865_v27 = vsub.f32 %v2171_v45, %v2322_v20  ;;  %v2866_v22 = vsub.f32 %v2177_v49, %v2322_v20  ;;  %v2867_v37 = vsub.f32 %v2183_v53, %v2322_v20 }
 0x26d   : > { %v835_v18 = vmul.f32 1.442695, %v2863_v52  ;;  %1462 = vpow2.f32 %v823_v42  ;;  %v2868_v41 = vsub.f32 %v2189_v57, %v2322_v20  ;;  %v825_v42 = vmul.f32 1.442695, %v758_v4 }
 0x26e   : > { %v843_v29 = vmul.f32 1.442695, %v2865_v27  ;;  %1464 = vpow2.f32 %v827_v36  ;;  %v847_v33 = vmul.f32 1.442695, %v2866_v22  ;;  %v851_v40 = vmul.f32 1.442695, %v2867_v37 }
 0x26f   : > { %1466 = vpow2.f32 %v831_v14  ;;  %v855_v56 = vmul.f32 1.442695, %v2868_v41  ;;  %v821_v36 = vmul.f32 1.442695, %v756_v60  ;;  %v829_v14 = vmul.f32 1.442695, %v760_v12 }
 0x270   : > { %1468 = vpow2.f32 %v835_v18  ;;  %v833_v11 = vmul.f32 1.442695, %v762_v16  ;;  %v837_v18 = vmul.f32 1.442695, %v764_v2  ;;  %v841_v57 = vmul.f32 1.442695, %v766_v63 }
 0x271   : > { %1470 = vpow2.f32 %v839_v8  ;;  %v845_v25 = vmul.f32 1.442695, %v768_v48  ;;  %v2869_v60 = vsub.f32 %v2180_v51, %v2359_v0  ;;  %v2870_v16 = vsub.f32 %v2186_v55, %v2359_v0 }
 0x272   : > { %1472 = vpow2.f32 %v843_v29  ;;  %v2871_v63 = vsub.f32 %v2192_v59, %v2359_v0  ;;  %v2872_v51 = vsub.f32 %v2195_v61, %v2322_v20  ;;  %v2873_v55 = vsub.f32 %v2839_v35, %v2359_v0 }
 0x273   : > { %1474 = vpow2.f32 %v847_v33  ;;  %v849_v4 = vmul.f32 1.442695, %v2869_v60  ;;  %v853_v2 = vmul.f32 1.442695, %v2870_v16  ;;  %v2874_v59 = vsub.f32 %v2201_v1, %v2322_v20 }
 0x274   : > { %v2482_v45 = vpop.eup %1456  ;;  %1476 = vpow2.f32 %v851_v40  ;;  %v857_v48 = vmul.f32 1.442695, %v2871_v63  ;;  %v859_v22 = vmul.f32 1.442695, %v2872_v51  ;;  %v861_v37 = vmul.f32 1.442695, %v2873_v55 }
 0x275   : > { %v2484_v49 = vpop.eup %1458  ;;  %1478 = vpow2.f32 %v855_v56  ;;  %v863_v41 = vmul.f32 1.442695, %v2874_v59  ;;  %v2875_v56 = vsub.f32 %v2840_v39, %v2359_v0  ;;  %v2883_v59 = vsub.f32 %v2844_v28, %v2359_v0 }
 0x276   : > { %v1461_v53 = vpop.eup %1460  ;;  %1480 = vpow2.f32 %v821_v36 }
 0x277   : > { %v1463_v50 = vpop.eup %1462  ;;  %1482 = vpow2.f32 %v825_v42  ;;  %v865_v61 = vmul.f32 1.442695, %v2875_v56 }
 0x278   : > { %v2486_v52 = vpop.eup %1464  ;;  %1484 = vpow2.f32 %v829_v14  ;;  %v947_v36 = vpack.c.bf16 %v1463_v50, %v1461_v53  ;;  %v2877_v50 = vsub.f32 %v2841_v43, %v2359_v0 }
 0x279   : > { %v2488_v8 = vpop.eup %1466  ;;  %1486 = vpow2.f32 %v833_v11 }
 0x27a   : > { %v2493_v12 = vpop.eup %1468  ;;  %1488 = vpow2.f32 %v837_v18  ;;  %v949_v14 = vpack.c.bf16 %v2488_v8, %v2486_v52  ;;  %v2876_v18 = vsub.f32 %v2207_v5, %v2322_v20  ;;  %v869_v52 = vmul.f32 1.442695, %v2877_v50 }
 0x27b   : > { %v2498_v27 = vpop.eup %1470  ;;  %1490 = vpow2.f32 %v841_v57  ;;  %v2878_v8 = vsub.f32 %v2213_v9, %v2322_v20  ;;  %v2879_v5 = vsub.f32 %v2842_v47, %v2359_v0  ;;  %v2881_v9 = vsub.f32 %v2843_v26, %v2359_v0 }
 0x27c   : > { %v2503_v29 = vpop.eup %1472  ;;  %1492 = vpow2.f32 %v845_v25  ;;  %v951_v35 = vpack.c.bf16 %v2498_v27, %v2493_v12  ;;  %v867_v57 = vmul.f32 1.442695, %v2876_v18  ;;  %v2880_v27 = vsub.f32 %v2219_v13, %v2322_v20 }
 0x27d   : > { %v2508_v33 = vpop.eup %1474  ;;  %1494 = vpow2.f32 %v849_v4  ;;  %v871_v60 = vmul.f32 1.442695, %v2878_v8  ;;  %v873_v16 = vmul.f32 1.442695, %v2879_v5  ;;  %v877_v51 = vmul.f32 1.442695, %v2881_v9 }
 0x27e   : > { %v2513_v40 = vpop.eup %1476  ;;  %1496 = vpow2.f32 %v853_v2  ;;  %v953_v11 = vpack.c.bf16 %v2508_v33, %v2503_v29  ;;  %v875_v63 = vmul.f32 1.442695, %v2880_v27  ;;  %v2882_v47 = vsub.f32 %v2225_v17, %v2322_v20 }
 0x27f   : > { %v2521_v42 = vpop.eup %1478  ;;  %1498 = vpow2.f32 %v857_v48  ;;  %v2884_v26 = vsub.f32 %v2231_v21, %v2322_v20  ;;  %v2885_v17 = vsub.f32 %v2845_v31, %v2359_v0  ;;  %v2887_v21 = vsub.f32 %v2846_v44, %v2359_v0 }
 0x280   : > { %v1481_v1 = vpop.eup %1480  ;;  %1500 = vpow2.f32 %v859_v22  ;;  %v955_v39 = vpack.c.bf16 %v2521_v42, %v2513_v40  ;;  %v879_v55 = vmul.f32 1.442695, %v2882_v47  ;;  %v2888_v31 = vsub.f32 %v2243_v38, %v2322_v20 }
 0x281   : > { %v1483_v53 = vpop.eup %1482  ;;  %1502 = vpow2.f32 %v861_v37  ;;  %v885_v18 = vmul.f32 1.442695, %v2885_v17  ;;  %v2891_v38 = vsub.f32 %v2848_v34, %v2359_v0  ;;  %v2894_v34 = vsub.f32 %v2261_v62, %v2322_v20 }
 0x282   : > { %v1485_v25 = vpop.eup %1484  ;;  %1504 = vpow2.f32 %v863_v41  ;;  %v948_v4 = vpack.c.bf16 %v1483_v53, %v1481_v1  ;;  %v881_v41 = vmul.f32 1.442695, %v2883_v59  ;;  %v2886_v53 = vsub.f32 %v2237_v30, %v2322_v20  ;;  %v2897_v59 = vld [vmem:[#allocation32_spill] sm:$0xff] }
 0x283   : > { %v1487_v12 = vpop.eup %1486  ;;  %1506 = vpow2.f32 %v865_v61  ;;  %v883_v61 = vmul.f32 1.442695, %v2884_v26  ;;  %v2889_v30 = vsub.f32 %v2847_v7, %v2359_v0  ;;  %v2892_v7 = vsub.f32 %v2255_v54, %v2322_v20 }
 0x284   : > { %v1489_v2 = vpop.eup %1488  ;;  %1508 = vpow2.f32 %v867_v57  ;;  %1015 = vmatprep.subr.bf16.mxu1 %v948_v4  ;;  %v950_v43 = vpack.c.bf16 %v1487_v12, %v1485_v25  ;;  %v887_v28 = vmul.f32 1.442695, %v2886_v53  ;;  %v889_v25 = vmul.f32 1.442695, %v2887_v21  ;;  %v2902_v53 = vld [vmem:[#allocation35_spill] sm:$0xff] }
 0x285   : > { %v1491_v48 = vpop.eup %1490  ;;  %1510 = vpow2.f32 %v869_v52  ;;  %1016 = vmatpush1.bf16.msra.mxu1 %v947_v36  ;;  %v893_v4 = vmul.f32 1.442695, %v2889_v30  ;;  %v903_v47 = vmul.f32 1.442695, %v2894_v34  ;;  %v2896_v29 = vsub.f32 %v2267_v6, %v2322_v20 }
 0x286   : > { %v1493_v22 = vpop.eup %1492  ;;  %1512 = vpow2.f32 %v871_v60  ;;  %1017 = vmatprep.subr.bf16.mxu1 %v950_v43  ;;  %v952_v37 = vpack.c.bf16 %v1491_v48, %v1489_v2  ;;  %v891_v60 = vmul.f32 1.442695, %v2888_v31  ;;  %v2898_v62 = vsub.f32 %v2897_v59, %v2359_v0 }
 0x287   : > { %v1495_v13 = vpop.eup %1494  ;;  %1514 = vpow2.f32 %v873_v16  ;;  %v2890_v16 = vsub.f32 %v2249_v46, %v2322_v20  ;;  %v2893_v46 = vsub.f32 %v2849_v15, %v2359_v0  ;;  %v907_v33 = vmul.f32 1.442695, %v2896_v29 }
 0x288   : > { %v1497_v56 = vpop.eup %1496  ;;  %1516 = vpow2.f32 %v875_v63  ;;  %v954_v36 = vpack.c.bf16 %v1495_v13, %v1493_v22  ;;  %v897_v63 = vmul.f32 1.442695, %v2891_v38  ;;  %v2901_v17 = vsub.f32 %v2852_v19, %v2359_v0 }
 0x289   : > { %v1499_v1 = vpop.eup %1498  ;;  %1518 = vpow2.f32 %v877_v51  ;;  %1018 = vmatpush1.bf16.msra.mxu1 %v949_v14  ;;  %v895_v44 = vmul.f32 1.442695, %v2890_v16  ;;  %v901_v9 = vmul.f32 1.442695, %v2893_v46  ;;  %v2903_v40 = vsub.f32 %v2902_v53, %v2322_v20  ;;  %v2914_v46 = vld [vmem:[#allocation42_spill] sm:$0xff] }
 0x28a   : > { %v1501_v57 = vpop.eup %1500  ;;  %1520 = vpow2.f32 %v879_v55  ;;  %1019 = vmatprep.subr.bf16.mxu1 %v952_v37  ;;  %v956_v50 = vpack.c.bf16 %v1499_v1, %v1497_v56  ;;  %v2895_v37 = vsub.f32 %v2850_v3, %v2359_v0  ;;  %v2899_v3 = vld [vmem:[#allocation33_spill] sm:$0xff] }
 0x28b   : > { %v1503_v52 = vpop.eup %1502  ;;  %1522 = vpow2.f32 %v881_v41  ;;  %v909_v41 = vmul.f32 1.442695, %v2898_v62  ;;  %v915_v42 = vmul.f32 1.442695, %v2903_v40 }
 0x28c   : > { %v1505_v8 = vpop.eup %1504  ;;  %1524 = vpow2.f32 %v883_v61  ;;  %v905_v15 = vmul.f32 1.442695, %v2895_v37  ;;  %v2900_v61 = vsub.f32 %v2899_v3, %v2322_v20  ;;  %v2918_v37 = vsub.f32 %v2857_v58, %v2359_v0 }
 0x28d   : > { %v1507_v14 = vpop.eup %1506  ;;  %1526 = vpow2.f32 %v885_v18  ;;  %1020 = vmatpush1.bf16.msra.mxu1 %v951_v35  ;;  %v957_v12 = vpack.c.bf16 %v1505_v8, %v1501_v57  ;;  %v899_v35 = vmul.f32 1.442695, %v2892_v7  ;;  %v913_v18 = vmul.f32 1.442695, %v2901_v17 }
 0x28e   : > { %v1509_v5 = vpop.eup %1508  ;;  %1528 = vpow2.f32 %v887_v28  ;;  %1021 = vmatprep.subr.bf16.mxu1 %v954_v36  ;;  %v958_v2 = vpack.c.bf16 %v1507_v14, %v1503_v52  ;;  %v911_v36 = vmul.f32 1.442695, %v2900_v61  ;;  %v2904_v28 = vsub.f32 %v2853_v23, %v2359_v0 }
 0x28f   : > { %v1511_v27 = vpop.eup %1510  ;;  %1530 = vpow2.f32 %v889_v25  ;;  %v2905_v25 = vld [vmem:[#allocation37_spill] sm:$0xff]  ;;  %v2907_v14 = vsub.f32 %v2854_v24, %v2359_v0 }
 0x290   : > { %v1513_v43 = vpop.eup %1512  ;;  %1532 = vpow2.f32 %v891_v60  ;;  %v2906_v8 = vsub.f32 %v2905_v25, %v2322_v20 }
 0x291   : > { %v1515_v48 = vpop.eup %1514  ;;  %1534 = vpow2.f32 %v893_v4  ;;  %1022 = vmatpush1.bf16.msra.mxu1 %v953_v11  ;;  %v959_v51 = vpack.c.bf16 %v1513_v43, %v1509_v5  ;;  %v921_v30 = vmul.f32 1.442695, %v2907_v14  ;;  %v2908_v5 = vld [vmem:[#allocation39_spill] sm:$0xff]  ;;  %v2912_v43 = vld [vmem:[#allocation41_spill] sm:$0xff] }
 0x292   : > { %v1517_v22 = vpop.eup %1516  ;;  %1536 = vpow2.f32 %v895_v44  ;;  %1023 = vmatprep.subr.bf16.mxu1 %v956_v50  ;;  %v960_v54 = vpack.c.bf16 %v1515_v48, %v1511_v27  ;;  %v917_v50 = vmul.f32 1.442695, %v2904_v28  ;;  %v919_v19 = vmul.f32 1.442695, %v2906_v8  ;;  %v2910_v44 = vld [vmem:[#allocation40_spill] sm:$0xff] }
 0x293   : > { %v1519_v55 = vpop.eup %1518  ;;  %1538 = vpow2.f32 %v897_v63  ;;  %v2909_v23 = vsub.f32 %v2908_v5, %v2322_v20  ;;  %v2913_v7 = vsub.f32 %v2912_v43, %v2322_v20 }
 0x294   : > { %v1521_v13 = vpop.eup %1520  ;;  %1540 = vpow2.f32 %v899_v35 }
 0x295   : > { %v1523_v11 = vpop.eup %1522  ;;  %1542 = vpow2.f32 %v901_v9  ;;  %1024 = vmatpush1.bf16.msra.mxu1 %v955_v39  ;;  %v961_v56 = vpack.c.bf16 %v1521_v13, %v1517_v22  ;;  %v927_v24 = vmul.f32 1.442695, %v2913_v7  ;;  %v2915_v9 = vsub.f32 %v2914_v46, %v2359_v0 }
 0x296   : > { %v1525_v26 = vpop.eup %1524  ;;  %1544 = vpow2.f32 %v903_v47  ;;  %1025 = vmatprep.subr.bf16.mxu1 %v958_v2  ;;  %v962_v6 = vpack.c.bf16 %v1523_v11, %v1519_v55  ;;  %v2911_v2 = vsub.f32 %v2910_v44, %v2359_v0  ;;  %v2916_v47 = vld [vmem:[#allocation43_spill] sm:$0xff]  ;;  %v1078_v46 = vlaneseq }
 0x297   : > { %v1527_v1 = vpop.eup %1526  ;;  %1546 = vpow2.f32 %v905_v15  ;;  %v929_v22 = vmul.f32 1.442695, %v2915_v9  ;;  %v933_v15 = vmul.f32 1.442695, %v2918_v37  ;;  %v1452_v44 = vld [vmem:[%s2087_s1 + $0x10] ss:$8 sps:$4 sm:$0xff]  }
 0x298   : > { %v1529_v57 = vpop.eup %1528  ;;  %1548 = vpow2.f32 %v907_v33  ;;  %v925_v27 = vmul.f32 1.442695, %v2911_v2  ;;  %v2919_v33 = vld [vmem:[#allocation45_spill] sm:$0xff] }
 0x299   : > { %v1531_v39 = vpop.eup %1530  ;;  %1550 = vpow2.f32 %v909_v41  ;;  %1026 = vmatpush1.bf16.msra.mxu1 %v957_v12  ;;  %v963_v52 = vpack.c.bf16 %v1529_v57, %v1525_v26  ;;  %v923_v12 = vmul.f32 1.442695, %v2909_v23  ;;  %v2920_v11 = vsub.f32 %v2919_v33, %v2322_v20  ;;  %v1453_v2 = vld [vmem:[%s2087_s1 + $0x24] ss:$8 sps:$4 sm:$0xff]  }
 0x29a   : > { %v1533_v21 = vpop.eup %1532  ;;  %1552 = vpow2.f32 %v911_v36  ;;  %1027 = vmatprep.subr.bf16.mxu1 %v960_v54  ;;  %v964_v31 = vpack.c.bf16 %v1531_v39, %v1527_v1  ;;  %v2917_v54 = vsub.f32 %v2916_v47, %v2322_v20  ;;  %v2921_v26 = vsub.f32 %v2858_v10, %v2359_v0  ;;  %v2922_v36 = vld [vmem:[#allocation47_spill] sm:$0xff]  ;;  %v1100_v33 = vld [vmem:[%s2097_s8 + $0x30] sm:$0xff] }
 0x29b   : > { %v1535_v60 = vpop.eup %1534  ;;  %1554 = vpow2.f32 %v913_v18  ;;  %v935_v59 = vmul.f32 1.442695, %v2920_v11  ;;  %v2923_v58 = vsub.f32 %v2922_v36, %v2322_v20  ;;  %v2924_v1 = vsub.f32 %v2319_v32, %v2359_v0  ;;  %v1099_v36 = vld [vmem:[%s2097_s8 + $0x28] sm:$0xff] }
 0x29c   : > { %v1537_v4 = vpop.eup %1536  ;;  %1556 = vpow2.f32 %v915_v42  ;;  %v937_v3 = vmul.f32 1.442695, %v2921_v26  ;;  %v1079_v47 = vshrl.u32 %v1078_v46, 7 }
 0x29d   : > { %v1539_v16 = vpop.eup %1538  ;;  %1558 = vpow2.f32 %v917_v50  ;;  %1028 = vmatpush1.bf16.msra.mxu1 %v959_v51  ;;  %v965_v38 = vpack.c.bf16 %v1537_v4, %v1533_v21  ;;  %v931_v51 = vmul.f32 1.442695, %v2917_v54  ;;  %v941_v17 = vmul.f32 1.442695, %v2924_v1 }
 0x29e   : > { %v1541_v63 = vpop.eup %1540  ;;  %1560 = vpow2.f32 %v919_v19  ;;  %1029 = vmatprep.subr.bf16.mxu1 %v962_v6  ;;  %v966_v35 = vpack.c.bf16 %v1539_v16, %v1535_v60  ;;  %v1450_v16 = vld [vmem:[%s2087_s1 + $0x14] ss:$8 sps:$4 sm:$0xff]   ;;  %v1080_v54 = vsub.s32 0, %v1079_v47 }
 0x29f   : > { %v1543_v48 = vpop.eup %1542  ;;  %1562 = vpow2.f32 %v921_v30 }
 0x2a0   : > { %v1545_v34 = vpop.eup %1544  ;;  %1564 = vpow2.f32 %v923_v12  ;;  %v1447_v12 = vld [vmem:[%s2087_s1] ss:$8 sps:$4 sm:$0xff]  }
 0x2a1   : > { %v1547_v55 = vpop.eup %1546  ;;  %1566 = vpow2.f32 %v925_v27  ;;  %1030 = vmatpush1.bf16.msra.mxu1 %v961_v56  ;;  %v967_v13 = vpack.c.bf16 %v1545_v34, %v1541_v63  ;;  %v939_v56 = vmul.f32 1.442695, %v2923_v58  ;;  %v1455_v27 = vld [vmem:[%s2087_s1 + $0x20] ss:$8 sps:$4 sm:$0xff]  }
 0x2a2   : > { %v1549_v29 = vpop.eup %1548  ;;  %1568 = vpow2.f32 %v927_v24  ;;  %1031 = vmatprep.subr.bf16.mxu1 %v964_v31  ;;  %v968_v62 = vpack.c.bf16 %v1547_v55, %v1543_v48  ;;  %v1101_v58 = vld [vmem:[%s2097_s8 + $0x38] sm:$0xff] }
 0x2a3   : > { %v1551_v41 = vpop.eup %1550  ;;  %1570 = vpow2.f32 %v929_v22 }
 0x2a4   : > { %v1553_v61 = vpop.eup %1552  ;;  %1572 = vpow2.f32 %v931_v51 }
 0x2a5   : > { %v1555_v6 = vpop.eup %1554  ;;  %1574 = vpow2.f32 %v933_v15  ;;  %1032 = vmatpush1.bf16.msra.mxu1 %v963_v52  ;;  %v969_v18 = vpack.c.bf16 %v1553_v61, %v1549_v29  ;;  %v1094_v15 = vld [vmem:[%s2097_s8] sm:$0xff]  ;;  %v1097_v61 = vld [vmem:[%s2097_s8 + $0x18] sm:$0xff] }
 0x2a6   : > { %v1557_v57 = vpop.eup %1556  ;;  %1576 = vpow2.f32 %v935_v59  ;;  %1033 = vmatprep.subr.bf16.mxu1 %v966_v35  ;;  %v970_v53 = vpack.c.bf16 %v1555_v6, %v1551_v41  ;;  %v1098_v29 = vld [vmem:[%s2097_s8 + $0x20] sm:$0xff]  ;;  %v1095_v59 = vld [vmem:[%s2097_s8 + $0x8] sm:$0xff] }
 0x2a7   : > { %v1559_v10 = vpop.eup %1558  ;;  %1578 = vpow2.f32 %v937_v3 }
 0x2a8   : > { %v1561_v40 = vpop.eup %1560  ;;  %1580 = vpow2.f32 %v939_v56 }
 0x2a9   : > { %v1563_v42 = vpop.eup %1562  ;;  %1582 = vpow2.f32 %v941_v17  ;;  %1034 = vmatpush1.bf16.msra.mxu1 %v965_v38  ;;  %v971_v20 = vpack.c.bf16 %v1561_v40, %v1557_v57 }
 0x2aa   : > { %v1565_v39 = vpop.eup %1564  ;;  %1035 = vmatprep.subr.bf16.mxu1 %v968_v62  ;;  %v972_v28 = vpack.c.bf16 %v1563_v42, %v1559_v10 }
 0x2ab   : > { %v1567_v50 = vpop.eup %1566 }
 0x2ac   : > { %v1569_v32 = vpop.eup %1568 }
 0x2ad   : > { %v1571_v0 = vpop.eup %1570  ;;  %1036 = vmatpush1.bf16.msra.mxu1 %v967_v13  ;;  %v973_v52 = vpack.c.bf16 %v1569_v32, %v1565_v39  ;;  %v1096_v13 = vld [vmem:[%s2097_s8 + $0x10] sm:$0xff] }
 0x2ae   : > { %v1573_v21 = vpop.eup %1572  ;;  %1037 = vmatprep.subr.bf16.mxu1 %v970_v53  ;;  %v974_v25 = vpack.c.bf16 %v1571_v0, %v1567_v50 }
 0x2af   : > { %v1575_v8 = vpop.eup %1574 }
 0x2b0   : > { %v1577_v19 = vpop.eup %1576 }
 0x2b1   : > { %v1579_v31 = vpop.eup %1578  ;;  %1038 = vmatpush1.bf16.msra.mxu1 %v969_v18  ;;  %v975_v60 = vpack.c.bf16 %v1577_v19, %v1573_v21 }
 0x2b2   : > { %v1581_v14 = vpop.eup %1580  ;;  %1039 = vmatprep.subr.bf16.mxu1 %v972_v28  ;;  %v976_v30 = vpack.c.bf16 %v1579_v31, %v1575_v8 }
 0x2b3   : > { %v1583_v4 = vpop.eup %1582  ;;  %v977_v5 = vpack.c.bf16 %v2482_v45, %v1581_v14 }
 0x2b4   : > { %v978_v23 = vpack.c.bf16 %v2484_v49, %v1583_v4 }
 0x2b5   : > { %1040 = vmatpush1.bf16.msra.mxu1 %v971_v20 }
 0x2b6   : > { %1041 = vmatprep.subr.bf16.mxu1 %v974_v25 }
 0x2b9   : > { %1042 = vmatpush1.bf16.msra.mxu1 %v973_v52 }
 0x2ba   : > { %1043 = vmatprep.subr.bf16.mxu1 %v976_v30 }
 0x2bd   : > { %1044 = vmatpush1.bf16.msra.mxu1 %v975_v60 }
 0x2be   : > { %1045 = vmatprep.subr.bf16.mxu1 %v978_v23 }
 0x2c1   : > { %1046 = vmatpush1.bf16.msra.mxu1 %v977_v5 }
 0x2c4   : > { %1048 = vmatmul.mubr.bf16.vlgmr.msra.gmra.mrb[0].mxu1 %v1447_v12 }
 0x2c5   : > { %1057 = vmatprep.mubr.bf16.mxu1 %v1450_v16 }
 0x2cc   : > { %1058 = vmatmul.mubr.bf16.gmra.mrb[4].mxu1 %v1452_v44 }
 0x2cd   : > { %1067 = vmatprep.mubr.bf16.mxu1 %v1453_v2 }
 0x2d4   : > { %1068 = vmatmul.mubr.bf16.gmra.mrb[8].mxu1 %v1455_v27 }
 0x397   : > { %v1049_v45 = vpop.f32.mrb[0].mxu1 }
 0x398   : > { %v1051_v49 = vpop.f32.mrb[1].mxu1 }
 0x399   : > { %v1053_v38 = vpop.f32.mrb[2].mxu1 }
 0x39a   : > { %v1055_v63 = vpop.f32.mrb[3].mxu1 }
 0x39f   : > { %v1059_v43 = vpop.f32.mrb[4].mxu1 }
 0x3a0   : > { %v1061_v7 = vpop.f32.mrb[5].mxu1 }
 0x3a1   : > { %v1063_v24 = vpop.f32.mrb[6].mxu1 }
 0x3a2   : > { %v1065_v35 = vpop.f32.mrb[7].mxu1 }
 0x3a7   : > { %v1069_v48 = vpop.f32.mrb[8].mxu1 }
 0x3a8   : > { %1584 = vrcp.f32 %v1069_v48  ;;  %v1071_v9 = vpop.f32.mrb[9].mxu1 }
 0x3a9   : > { %1586 = vrcp.f32 %v1071_v9  ;;  %v1073_v22 = vpop.f32.mrb[10].mxu1 }
 0x3aa   : > { %v1074_v34 = vpop.f32.mrb[11].mxu1 }
 0x3b2   : > { %v1585_v51 = vpop.eup %1584 }
 0x3b3   : > { %v1587_v55 = vpop.eup %1586  ;;  %v1081_v37 = vrot.slane %v1585_v51, %v1080_v54 }
 0x3b4   : > { %v1085_v11 = vrot.slane %v1587_v55, %v1080_v54 }
 0x3b5   : > { %v1086_v62 = vmul.f32 %v1081_v37, %v1049_v45  ;;  %v1088_v41 = vmul.f32 %v1081_v37, %v1053_v38  ;;  %v1090_v26 = vmul.f32 %v1081_v37, %v1059_v43  ;;  %v1092_v3 = vmul.f32 %v1081_v37, %v1063_v24 }
 0x3b6   : > { %v1087_v56 = vmul.f32 %v1085_v11, %v1051_v49  ;;  %v1089_v6 = vmul.f32 %v1085_v11, %v1055_v63  ;;  %v1091_v1 = vmul.f32 %v1085_v11, %v1061_v7  ;;  %v1093_v17 = vmul.f32 %v1085_v11, %v1065_v35 }
 0x3b7   : > { %v1102_v18 = vadd.f32 %v1094_v15, %v1086_v62  ;;  %v1104_v57 = vadd.f32 %v1096_v13, %v1088_v41  ;;  %v1106_v53 = vadd.f32 %v1098_v29, %v1090_v26  ;;  %v1108_v10 = vadd.f32 %v1100_v33, %v1092_v3 }
 0x3b8   : > { %v1103_v40 = vadd.f32 %v1095_v59, %v1087_v56  ;;  %v1105_v42 = vadd.f32 %v1097_v61, %v1089_v6  ;;  %v1107_v20 = vadd.f32 %v1099_v36, %v1091_v1  ;;  %v1109_v39 = vadd.f32 %v1101_v58, %v1093_v17 }
 0x3b9   : > { %1110 = vst [vmem:[%s354_s27] sm:$0xff] %v1102_v18  ;;  %1112 = vst [vmem:[%s354_s27 + $0x10] sm:$0xff] %v1104_v57 }
 0x3ba   : > { %1114 = vst [vmem:[%s354_s27 + $0x20] sm:$0xff] %v1106_v53  ;;  %1116 = vst [vmem:[%s354_s27 + $0x30] sm:$0xff] %v1108_v10 }
 0x3bb   : > { %1111 = vst [vmem:[%s354_s27 + $0x8] sm:$0xff] %v1103_v40  ;;  %1113 = vst [vmem:[%s354_s27 + $0x18] sm:$0xff] %v1105_v42 }
 0x3bc   : > { %1115 = vst [vmem:[%s354_s27 + $0x28] sm:$0xff] %v1107_v20  ;;  %1117 = vst [vmem:[%s354_s27 + $0x38] sm:$0xff] %v1109_v39 }
 0x3bd   : > { %1721 = shalt.err (!%p1718_p7)
}
 0x3be   : > { %s1722_s11 = scalar_lea.hbm %s2672_s13, 1024  ;;  %s1726_s23 = scalar_lea.hbm %s2727_s4, 2048 }
 0x3bf   : > { %p1723_p3 = scmp.ne.s32.totalorder %s2672_s13, %s1722_s11  ;;  %p1727_p12 = scmp.lt.u32.totalorder %s2672_s13, %s2727_s4 }
 0x3c0   : > { %p1728_p4 = scmp.lt.u32.totalorder %s1726_s23, %s1722_s11  ;;  %p1730_p0 = scmp.lt.u32.totalorder %s1722_s11, %s2672_s13 }
 0x3c1   : > { %p1724_p10 = pnand %p1723_p3, %p2925_p1 }
 0x3c2   : > { %p1729_p8 = por %p1728_p4, %p1727_p12 }
 0x3c3   : > { %p1725_p9 = pneg %p1724_p10 }
 0x3c4   : > { %p1731_p6 = por %p1730_p0, %p1729_p8 }
 0x3c6   : > { %p1732_p13 = pnand %p1731_p6, %p1725_p9 }
 0x3c8   : > { %1735 = shalt.err (!%p1732_p13)
}
 0x3c9   : > { %s1810_s10 = smov 256   ;;  %s1811_s1 = smov 16  }
 0x3ca   : > { %1359 = dma.vmem_to_hbm [thread:$0]  (%p2925_p1), %s2674_s17, 1024, %s2672_s13, %s1119_s26, %s1810_s10, %s1810_s10, %s1811_s1  }
 0x3cb PF: > { %s2926_s7 = sld [smem:[#allocation19_spill]]  ;;  %s2927_s20 = sld [smem:[#allocation16_spill]] }
 0x3cc   : > { %s1149_s22 = sand.u32 1, %s1778_s15  }
 0x3cd   : > { %s1150_s8 = scalar_lea.sflag [#allocation4], %s1149_s22 }
 0x3d1   : > { %p2928_p11 = scmp.ne.s32.totalorder %s2926_s7, 0  ;;  %p2929_p2 = scmp.ge.s32.totalorder %s2927_s20, 2 }
 0x3d3   : > { %p1375_p5 = pnand %p2929_p2, %p2928_p11 }
 0x3d5   : > { %1773 = dma.done.wait (!%p1375_p5), %s1150_s8, 1024  }
 0x3d6   : > { %1775 = vsyncadd (!%p1375_p5), %s1150_s8, 4294966272  ;;  %s26_s20 = sadd.s32 1, %s2927_s20   ;;  %s2930_s21 = sld [smem:[#allocation15_spill]] }
 0x3d7   : > { %p23_p7 = scmp.ge.s32.totalorder %s26_s20, 4   ;;  %s2931_s17 = sld [smem:[#allocation18_spill]] }
 0x3d8   : > { %s2932_s28 = sld [smem:[#allocation17_spill]]  ;;  %s2933_s15 = smov %s1782_s16 }
 0x3d9   : > { %s2935_s18 = smov %s1794_s19  ;;  %25 = sbr.rel (!%p23_p7) target bundleno = 13 (0xd), region = 118 }
 0x3dc   : > { %s2934_s16 = smov %s2930_s21 }
 0x3de   : > { %s2936_s19 = smov %s2932_s28 }
 0x3e0   :  { %1155 = vsyncpa [#allocation3], 1 }
 0x3e1   :  { %1157 = vsyncpa [#allocation3 + $0x1], 1 }
 0x3e2   :  { %1158 = vsyncpa [#allocation6], 1 }
 0x3e3   :  { %1160 = vsyncpa [#allocation6 + $0x1], 1 }
 0x3e4   :  { %1161 = vsyncpa [#allocation9], 1 }
 0x3e5   :  { %1163 = vsyncpa [#allocation9 + $0x1], 1 }
 0x3e6   :  { %1164 = vsyncpa [#allocation4], 1 }
 0x3e7   :  { %1166 = vsyncpa [#allocation4 + $0x1], 1 }

</bundles_post_ra>
